<compile_context>
chip_gen: v7x
topology: tpu7x:2x2x1
jax: 0.10.0
libtpu: 0.0.40
codegen_flags: <defaults>
</compile_context>

<pallas_src>
import numpy as np
import jax
import jax.numpy as jnp
from jax.experimental import pallas as pl
from jax.experimental.pallas import tpu as pltpu


def _round_up(x, m):
    return (x + m - 1) // m * m


# ----------------------------------------------------------------------------
# Host-side glue: farthest point sampling + directional kNN (graph building)
# ----------------------------------------------------------------------------
def _fps(pos, n_samples):
    """Deterministic farthest point sampling starting at point 0."""
    # TODO(synk): dgl.farthest_point_sampler may use a different start index.
    N = pos.shape[0]
    idx = np.zeros(n_samples, dtype=np.int64)
    dist = np.full(N, np.inf, dtype=np.float64)
    for i in range(1, n_samples):
        d = np.sum((pos - pos[idx[i - 1]]) ** 2, axis=1)
        dist = np.minimum(dist, d)
        idx[i] = int(np.argmax(dist))
    return idx


def _pad_params_blockdiag(weights, biases, d0, K):
    """Block-diagonal, transposed, zero-padded Linear params (lane-dense)."""
    ws_bd, bs_bd = [], []
    prev, prev_p = d0, _round_up(d0, 8)
    for w, b in zip(weights, biases):
        w = np.asarray(w, np.float32)
        b = np.asarray(b, np.float32).reshape(-1)
        din, dout = w.shape
        assert din == prev, "MLP size chain mismatch"
        dout_p = _round_up(dout, 8)
        w_bd = np.zeros((K * dout_p, K * prev_p), np.float32)
        b_bd = np.zeros((K * dout_p, 1), np.float32)
        for k in range(K):
            w_bd[k * dout_p:k * dout_p + dout,
                 k * prev_p:k * prev_p + din] = w.T
            b_bd[k * dout_p:k * dout_p + dout, 0] = b
        ws_bd.append(w_bd)
        bs_bd.append(b_bd)
        prev, prev_p = dout, dout_p
    return ws_bd, bs_bd, prev, prev_p


def _choose_tile(M):
    """Lane tile from a small candidate set: minimize column padding and keep
    >=2 grid steps when the problem allows it (v7x has 2 TensorCores)."""
    m128 = _round_up(max(M, 1), 128)
    cands = [t for t in (2048, 1024, 512, 384, 256, 128) if t <= m128]
    tm = min(cands, key=lambda t: (_round_up(M, t), -t))
    if _round_up(M, tm) // tm < 2 and m128 >= 256:
        two = [t for t in cands if _round_up(M, t) // t >= 2]
        if two:
            tm = min(two, key=lambda t: (_round_up(M, t), -t))
    return tm, _round_up(M, tm)


# ----------------------------------------------------------------------------
# Pallas kernel: KNNConv — block-diagonal MLP (Linear+ReLU chain), max over K.
# ----------------------------------------------------------------------------
def knn_conv_mlp_max(x_bd, weights_bd, biases_bd, K, hout_p, tm):
    """x_bd: [K*D0_pad, M_pad] bf16, lane-dense, zero-padded.
    Returns [Hout_pad, M_pad] f32 = max_k relu(...relu(W1^T x_k + b1)...)."""
    kd0p, m_pad = x_bd.shape
    n_layers = len(weights_bd)
    grid = (m_pad // tm,)

    in_specs = [pl.BlockSpec((kd0p, tm), lambda i: (0, i))]
    args = [x_bd]
    for w, b in zip(weights_bd, biases_bd):
        # Constant index maps -> params stay VMEM-resident across grid steps.
        # TODO(synk): pipeline_mode=pl.Buffered(1) would drop their second
        # buffer (trivial VMEM saving); omitted for jax-version portability.
        in_specs.append(pl.BlockSpec(w.shape, lambda i: (0, 0)))
        in_specs.append(pl.BlockSpec(b.shape, lambda i: (0, 0)))
        args += [jnp.asarray(w, jnp.bfloat16), jnp.asarray(b, jnp.float32)]
    out_spec = pl.BlockSpec((hout_p, tm), lambda i: (0, i))

    def kernel(*refs):
        x_ref, out_ref = refs[0], refs[-1]
        h = x_ref[...]                                   # [K*D0p, TM] bf16
        for li in range(n_layers):
            w = refs[1 + 2 * li][...]                    # bf16 block-diagonal
            b = refs[2 + 2 * li][...]                    # [K*Doutp, 1] f32
            h = jnp.dot(w, h, preferred_element_type=jnp.float32)
            h = jnp.maximum(h + b, 0.0)                  # bias lane-broadcast
            if li < n_layers - 1:
                h = h.astype(jnp.bfloat16)               # feed MXU in bf16
        # max over the K neighbour slabs (sublane offsets multiples of 8)
        acc = h[:hout_p, :]
        for k in range(1, K):
            acc = jnp.maximum(acc, h[k * hout_p:(k + 1) * hout_p, :])
        out_ref[...] = acc

    # Accurate VMEM budget: ~2x the real per-step footprint (few MiB), no
    # arbitrary 32-48 MiB floor -> safe on v7x's 64 MiB physical VMEM.
    bytes_in = kd0p * tm * 2                       # bf16 input block
    bytes_out = hout_p * tm * 4                    # f32 output block
    bytes_params = sum(w.size * 2 + b.size * 4
                       for w, b in zip(weights_bd, biases_bd))
    bytes_inter = sum(w.shape[0] * tm * 4 for w in weights_bd)
    est = 2 * bytes_in + 2 * bytes_out + bytes_params + bytes_inter
    vmem_limit = int(min(max(2 * est, 8 * 1024 * 1024), 32 * 1024 * 1024))

    return pl.pallas_call(
        kernel,
        out_shape=jax.ShapeDtypeStruct((hout_p, m_pad), jnp.float32),
        grid_spec=pltpu.PrefetchScalarGridSpec(
            num_scalar_prefetch=0,
            grid=grid,
            in_specs=in_specs,
            out_specs=out_spec),
        compiler_params=pltpu.CompilerParams(
            dimension_semantics=("parallel",),
            vmem_limit_bytes=vmem_limit),
    )(*args)


# ----------------------------------------------------------------------------
# TransitionDown.forward
# ----------------------------------------------------------------------------
def transition_down(pos, feat, weights, biases, K=7):
    pos_np = np.asarray(pos, dtype=np.float32)
    feat_np = np.asarray(feat, dtype=np.float32)
    N = pos_np.shape[0]
    n_up = int(np.floor(N * 0.25))
    if n_up < 1:
        raise ValueError("TransitionDown needs at least 4 points (n_up >= 1).")

    # --- KNNGraphBuilder (host-side glue) ---
    cent = _fps(pos_np, n_up)
    mask = np.zeros(N, dtype=bool)
    mask[cent] = True
    up_idx = np.nonzero(mask)[0]          # centroids, sorted (matches bool-mask)
    down_idx = np.nonzero(~mask)[0]
    if len(down_idx) < K:
        raise ValueError(f"need at least K={K} non-centroid points")
    pos_up = pos_np[up_idx]
    pos_down = pos_np[down_idx]

    # directional kNN: K nearest non-centroid points for every centroid
    d2 = ((pos_up[:, None, :] - pos_down[None, :, :]) ** 2).sum(-1)
    neigh = np.argsort(d2, axis=1)[:, :K]                 # [M, K]
    src_global = down_idx[neigh]                          # [M, K]

    # --- RelativePositionMessage, built ON DEVICE (no K-duplicated transfer) ---
    M = n_up
    D0 = 3 + feat_np.shape[1]
    d0p = _round_up(D0, 8)
    tm, m_pad = _choose_tile(M)

    pos_dev = jnp.asarray(pos_np)
    feat_dev = jnp.asarray(feat_np)
    src_dev = jnp.asarray(src_global, dtype=jnp.int32)    # [M, K]
    up_dev = jnp.asarray(up_idx, dtype=jnp.int32)         # [M]
    rel = pos_dev[src_dev] - pos_dev[up_dev][:, None, :]  # [M, K, 3]
    msg = jnp.concatenate([rel, feat_dev[src_dev]], axis=-1)   # [M, K, D0]
    msg = jnp.pad(msg, ((0, m_pad - M), (0, 0), (0, d0p - D0)))
    # lane-dense slab [K*D0_pad, M_pad], shipped through HBM as bf16
    x_bd = jnp.transpose(msg, (1, 2, 0)).reshape(K * d0p, m_pad)
    x_bd = x_bd.astype(jnp.bfloat16)
    # TODO(synk): move the gather fully in-kernel (scalar-prefetched neighbor
    # indices in SMEM + per-row DMA from feat kept in HBM with pl.ANY) to also
    # de-duplicate the K copies of each source row in HBM.

    # --- KNNConv (Pallas): block-diagonal MLP + K-max, tiled over M ---
    ws_bd, bs_bd, hout, hout_p = _pad_params_blockdiag(weights, biases, D0, K)
    out_t = knn_conv_mlp_max(x_bd, ws_bd, bs_bd, K, hout_p, tm)  # [Hout_p, M_pad]
    feat_res = out_t[:hout, :M].T                          # [M, Hout]
    pos_res = jnp.asarray(pos_up)                          # [M, 3]

    # --- graph_up1: kNN graph among centroids (k=7, glue / no compute) ---
    k_up = min(7, n_up - 1)
    d2u = ((pos_up[:, None, :] - pos_up[None, :, :]) ** 2).sum(-1)
    np.fill_diagonal(d2u, np.inf)
    nn_up = np.argsort(d2u, axis=1)[:, :k_up]
    graph_up1 = np.stack([nn_up.reshape(-1),
                          np.repeat(np.arange(n_up), k_up)])

    # TODO(synk): DGL batched-graph object `g` has no Pallas/JAX equivalent;
    # returning its node/edge data instead.
    g_data = {
        "pos_hits_xyz": pos_np,
        "center": mask.astype(np.float32),
        "edges_src": src_global.reshape(-1),
        "edges_dst": np.repeat(up_idx, K),
    }
    return pos_res, feat_res, graph_up1, g_data


# ----------------------------------------------------------------------------
# Pure-JAX reference of the in-kernel compute (silent correctness check)
# ----------------------------------------------------------------------------
def _ref_mlp_max(x, weights, biases):
    h = x  # [M, K, D0]
    for w, b in zip(weights, biases):
        h = jnp.maximum(jnp.einsum("mkd,dh->mkh", h, w) + b[None], 0.0)
    return jnp.max(h, axis=1)


if __name__ == "__main__":
    N, F_in, K = 32, 4, 7
    mlp_sizes = [3 + F_in, 16, 32]          # Linear(7,16) -> Linear(16,32)

    key = jax.random.PRNGKey(0)
    keys = jax.random.split(key, 2 + 2 * (len(mlp_sizes) - 1))
    pos = jax.random.normal(keys[0], (N, 3), jnp.float32)
    feat = jax.random.normal(keys[1], (N, F_in), jnp.float32)

    weights, biases = [], []
    for i in range(1, len(mlp_sizes)):
        fan_in, fan_out = mlp_sizes[i - 1], mlp_sizes[i]
        bound = 1.0 / np.sqrt(fan_in)
        w = jax.random.uniform(keys[2 * i], (fan_in, fan_out), jnp.float32,
                               -bound, bound)
        b = jax.random.uniform(keys[2 * i + 1], (1, fan_out), jnp.float32,
                               -bound, bound)
        weights.append(w)
        biases.append(b)

    pos_res, feat_res, graph_up1, g_data = transition_down(
        pos, feat, weights, biases, K=K)
    feat_res = jax.block_until_ready(feat_res)

    # silent correctness check of the Pallas hot path against pure-f32 JAX.
    # The kernel feeds the MXU bf16 operands (f32 accumulation), so the
    # tolerance reflects bf16 rounding of the inputs/weights.
    pos_np = np.asarray(pos)
    feat_np = np.asarray(feat)
    n_up = int(np.floor(N * 0.25))
    cent = _fps(pos_np, n_up)
    mask = np.zeros(N, dtype=bool)
    mask[cent] = True
    up_idx = np.nonzero(mask)[0]
    down_idx = np.nonzero(~mask)[0]
    d2 = ((pos_np[up_idx][:, None, :] - pos_np[down_idx][None, :, :]) ** 2).sum(-1)
    src = down_idx[np.argsort(d2, axis=1)[:, :K]]
    x_ref = np.concatenate(
        [pos_np[src] - pos_np[up_idx][:, None, :], feat_np[src]], axis=-1)
    want = _ref_mlp_max(jnp.asarray(x_ref, jnp.float32), weights, biases)
    assert np.allclose(np.asarray(feat_res), np.asarray(want),
                       atol=5e-2, rtol=5e-2), "Pallas kernel mismatch vs reference"
    assert pos_res.shape == (n_up, 3) and feat_res.shape == (n_up, mlp_sizes[-1])

    print("KERNEL_OK")
</pallas_src>

<mosaic_0001>
module attributes {stable_mosaic.version = 11 : i64} {
  func.func @kernel(%arg0: i32, %arg1: memref<56x128xbf16, #tpu.memory_space<vmem>>, %arg2: memref<112x56xbf16, #tpu.memory_space<vmem>>, %arg3: memref<112x1xf32, #tpu.memory_space<vmem>>, %arg4: memref<224x112xbf16, #tpu.memory_space<vmem>>, %arg5: memref<224x1xf32, #tpu.memory_space<vmem>>, %arg6: memref<32x128xf32, #tpu.memory_space<vmem>>) attributes {dimension_semantics = [#tpu.dimension_semantics<parallel>], iteration_bounds = array<i64: 1>, scalar_prefetch = 0 : i64, scratch_operands = 0 : i64, tpu.core_type = #tpu.core_type<tc>, window_params = [{transform_indices = @transform_0, window_bounds = array<i64: 56, 128>}, {pipeline_mode = #tpu.pipeline_mode<synchronous>, transform_indices = @transform_1, window_bounds = array<i64: 112, 56>}, {pipeline_mode = #tpu.pipeline_mode<synchronous>, transform_indices = @transform_2, window_bounds = array<i64: 112, 1>}, {pipeline_mode = #tpu.pipeline_mode<synchronous>, transform_indices = @transform_3, window_bounds = array<i64: 224, 112>}, {pipeline_mode = #tpu.pipeline_mode<synchronous>, transform_indices = @transform_4, window_bounds = array<i64: 224, 1>}, {transform_indices = @transform_5, window_bounds = array<i64: 32, 128>}]} {
    %c0 = arith.constant 0 : index
    %c0_0 = arith.constant 0 : index
    %0 = vector.load %arg1[%c0, %c0_0] : memref<56x128xbf16, #tpu.memory_space<vmem>>, vector<56x128xbf16>
    %c0_1 = arith.constant 0 : index
    %c0_2 = arith.constant 0 : index
    %1 = vector.load %arg2[%c0_1, %c0_2] : memref<112x56xbf16, #tpu.memory_space<vmem>>, vector<112x56xbf16>
    %c0_3 = arith.constant 0 : index
    %c0_4 = arith.constant 0 : index
    %2 = vector.load %arg3[%c0_3, %c0_4] : memref<112x1xf32, #tpu.memory_space<vmem>>, vector<112x1xf32>
    %cst = arith.constant dense<0.000000e+00> : vector<112x128xf32>
    %3 = tpu.matmul %1, %0, %cst {dimension_numbers = #tpu.dot_dimension_numbers<[1], [0], [0], [1], [0, 0, 1, 1], [], []>} : vector<112x56xbf16>, vector<56x128xbf16>, vector<112x128xf32> -> vector<112x128xf32>
    %4 = vector.broadcast %2 : vector<112x1xf32> to vector<112x128xf32>
    %5 = arith.addf %3, %4 : vector<112x128xf32>
    %cst_5 = arith.constant 0.000000e+00 : f32
    %6 = vector.broadcast %cst_5 : f32 to vector<112x128xf32>
    %7 = arith.maximumf %5, %6 : vector<112x128xf32>
    %8 = arith.truncf %7 : vector<112x128xf32> to vector<112x128xbf16>
    %c0_6 = arith.constant 0 : index
    %c0_7 = arith.constant 0 : index
    %9 = vector.load %arg4[%c0_6, %c0_7] : memref<224x112xbf16, #tpu.memory_space<vmem>>, vector<224x112xbf16>
    %c0_8 = arith.constant 0 : index
    %c0_9 = arith.constant 0 : index
    %10 = vector.load %arg5[%c0_8, %c0_9] : memref<224x1xf32, #tpu.memory_space<vmem>>, vector<224x1xf32>
    %cst_10 = arith.constant dense<0.000000e+00> : vector<224x128xf32>
    %11 = tpu.matmul %9, %8, %cst_10 {dimension_numbers = #tpu.dot_dimension_numbers<[1], [0], [0], [1], [0, 0, 1, 1], [], []>} : vector<224x112xbf16>, vector<112x128xbf16>, vector<224x128xf32> -> vector<224x128xf32>
    %12 = vector.broadcast %10 : vector<224x1xf32> to vector<224x128xf32>
    %13 = arith.addf %11, %12 : vector<224x128xf32>
    %cst_11 = arith.constant 0.000000e+00 : f32
    %14 = vector.broadcast %cst_11 : f32 to vector<224x128xf32>
    %15 = arith.maximumf %13, %14 : vector<224x128xf32>
    %16 = vector.extract_strided_slice %15 {offsets = [0, 0], sizes = [32, 128], strides = [1, 1]} : vector<224x128xf32> to vector<32x128xf32>
    %17 = vector.extract_strided_slice %15 {offsets = [32, 0], sizes = [32, 128], strides = [1, 1]} : vector<224x128xf32> to vector<32x128xf32>
    %18 = arith.maximumf %16, %17 : vector<32x128xf32>
    %19 = vector.extract_strided_slice %15 {offsets = [64, 0], sizes = [32, 128], strides = [1, 1]} : vector<224x128xf32> to vector<32x128xf32>
    %20 = arith.maximumf %18, %19 : vector<32x128xf32>
    %21 = vector.extract_strided_slice %15 {offsets = [96, 0], sizes = [32, 128], strides = [1, 1]} : vector<224x128xf32> to vector<32x128xf32>
    %22 = arith.maximumf %20, %21 : vector<32x128xf32>
    %23 = vector.extract_strided_slice %15 {offsets = [128, 0], sizes = [32, 128], strides = [1, 1]} : vector<224x128xf32> to vector<32x128xf32>
    %24 = arith.maximumf %22, %23 : vector<32x128xf32>
    %25 = vector.extract_strided_slice %15 {offsets = [160, 0], sizes = [32, 128], strides = [1, 1]} : vector<224x128xf32> to vector<32x128xf32>
    %26 = arith.maximumf %24, %25 : vector<32x128xf32>
    %27 = vector.extract_strided_slice %15 {offsets = [192, 0], sizes = [32, 128], strides = [1, 1]} : vector<224x128xf32> to vector<32x128xf32>
    %28 = arith.maximumf %26, %27 : vector<32x128xf32>
    %c0_12 = arith.constant 0 : index
    %c0_13 = arith.constant 0 : index
    %29 = vector.load %arg6[%c0_12, %c0_13] : memref<32x128xf32, #tpu.memory_space<vmem>>, vector<32x128xf32>
    tpu.vector_store %arg6[%c0_12, %c0_13], %28 {strides = array<i32>} : memref<32x128xf32, #tpu.memory_space<vmem>>, vector<32x128xf32>,
    return
  }
  func.func @transform_0(%arg0: i32) -> (i32, i32) {
    %c0_i32 = arith.constant 0 : i32
    %c0_i32_0 = arith.constant 0 : i32
    return %c0_i32, %arg0 : i32, i32
  }
  func.func @transform_1(%arg0: i32) -> (i32, i32) {
    %c0_i32 = arith.constant 0 : i32
    %c0_i32_0 = arith.constant 0 : i32
    %c0_i32_1 = arith.constant 0 : i32
    return %c0_i32, %c0_i32_0 : i32, i32
  }
  func.func @transform_2(%arg0: i32) -> (i32, i32) {
    %c0_i32 = arith.constant 0 : i32
    %c0_i32_0 = arith.constant 0 : i32
    %c0_i32_1 = arith.constant 0 : i32
    return %c0_i32, %c0_i32_0 : i32, i32
  }
  func.func @transform_3(%arg0: i32) -> (i32, i32) {
    %c0_i32 = arith.constant 0 : i32
    %c0_i32_0 = arith.constant 0 : i32
    %c0_i32_1 = arith.constant 0 : i32
    return %c0_i32, %c0_i32_0 : i32, i32
  }
  func.func @transform_4(%arg0: i32) -> (i32, i32) {
    %c0_i32 = arith.constant 0 : i32
    %c0_i32_0 = arith.constant 0 : i32
    %c0_i32_1 = arith.constant 0 : i32
    return %c0_i32, %c0_i32_0 : i32, i32
  }
  func.func @transform_5(%arg0: i32) -> (i32, i32) {
    %c0_i32 = arith.constant 0 : i32
    %c0_i32_0 = arith.constant 0 : i32
    return %c0_i32, %arg0 : i32, i32
  }
}

</mosaic_0001>

<bundles_post_ra>
// kernel: tpu_custom_call.1
= control target key start
LH: loop header
LB: loop body
LE: loop exit
PB: predicated region body
PF: predicated region fallthrough
CT: control target
= control target key end

     0   :  { %v1058_v1 = vmov 0.0   ;;  %vm1059_vm0 = vmmov 0   ;;  %v1060_v5 = vmov 0   ;;  %vm205_vm1 = vcmask 1043456   ;;  %s1346_s0 = inlined_call_operand.vmem [shape: bf16[56,128], index: 0, kind: input, shape index: {}]   ;;  %s1347_s1 = inlined_call_operand.vmem [shape: bf16[112,56], index: 1, kind: input, shape index: {}]   ;;  %s1348_s2 = inlined_call_operand.vmem [shape: f32[112,1], index: 2, kind: input, shape index: {}]   ;;  %s1349_s3 = inlined_call_operand.vmem [shape: bf16[224,112], index: 3, kind: input, shape index: {}]   ;;  %s1350_s4 = inlined_call_operand.vmem [shape: f32[224,1], index: 4, kind: input, shape index: {}]   ;;  %s1351_s5 = inlined_call_operand.hbm [shape: f32[32,128], index: 5, kind: output, shape index: {}]  }
   0x1   :  { %v1009_v0 = vld [vmem:[%s1346_s0] sm:$0xff]   ;;  %923 = vmatprep.subr.bf16.mxu0 %v1058_v1  ;;  %v1010_v2 = vld [vmem:[%s1346_s0 + $0x8] sm:$0xff]   ;;  %931 = vmatprep.mubr.msk.bf16.mxu0 %vm1059_vm0, %v1058_v1  ;;  %v1011_v3 = vld [vmem:[%s1346_s0 + $0x10] sm:$0xff]   ;;  %vm183_vm2 = vcmask 457728  }
   0x2   :  { %924 = vmatpush3.bf16.msra.mxu0 %v1009_v0  ;;  %v1012_v4 = vld [vmem:[%s1346_s0 + $0x18] ss:$0 sps:$4 sm:$0xff]   ;;  %1007 = vset.pattern.permute.xlu0 %v1060_v5  ;;  %v43_v6 = vld [vmem:[%s1348_s2] sm:$0xff]  ;;  %v45_v7 = vld [vmem:[%s1348_s2 + $0x10] sm:$0xff] }
   0x3   :  { %925 = vmatprep.subr.bf16.mxu0 %v1058_v1  ;;  %59 = vperm.xlu0 %1007, %v43_v6   ;;  %v44_v8 = vld [vmem:[%s1348_s2 + $0x8] sm:$0xff]  ;;  %v46_v9 = vld [vmem:[%s1348_s2 + $0x18] sm:$0xff]  ;;  %v207_v10 = vsel %vm205_vm1, %v1012_v4, 0  ;;  %v1013_v11 = vld [vmem:[%s1347_s1] sm:$0xff]  }
   0x4   :  { %1008 = vset.pattern.permute.xlu1 %v1060_v5  ;;  %v47_v12 = vld [vmem:[%s1348_s2 + $0x20] sm:$0xff]  ;;  %v48_v13 = vld [vmem:[%s1348_s2 + $0x28] sm:$0xff]  ;;  %v49_v14 = vld [vmem:[%s1348_s2 + $0x30] sm:$0xff] }
   0x5   :  { %69 = vperm.xlu1 %1008, %v45_v7   ;;  %v50_v15 = vld [vmem:[%s1348_s2 + $0x38] sm:$0xff]  ;;  %v1014_v16 = vld [vmem:[%s1347_s1 + $0x8] sm:$0xff]   ;;  %v51_v17 = vld [vmem:[%s1348_s2 + $0x40] sm:$0xff] }
   0x6   :  { %926 = vmatpush3.bf16.msra.mxu0 %v1010_v2  ;;  %v52_v18 = vld [vmem:[%s1348_s2 + $0x48] sm:$0xff]  ;;  %v53_v19 = vld [vmem:[%s1348_s2 + $0x50] sm:$0xff]  ;;  %v54_v20 = vld [vmem:[%s1348_s2 + $0x58] sm:$0xff] }
   0x7   :  { %927 = vmatprep.subr.bf16.mxu0 %v1058_v1  ;;  %64 = vperm.xlu0 %1007, %v44_v8   ;;  %v1015_v21 = vld [vmem:[%s1347_s1 + $0x10] sm:$0xff]   ;;  %v55_v22 = vld [vmem:[%s1348_s2 + $0x60] sm:$0xff]  ;;  %v56_v23 = vld [vmem:[%s1348_s2 + $0x68] sm:$0xff] }
   0x8   :  { %v347_v24 = vld [vmem:[%s1350_s4] sm:$0xff]  ;;  %v348_v25 = vld [vmem:[%s1350_s4 + $0x8] sm:$0xff] }
   0x9   :  { %74 = vperm.xlu1 %1008, %v46_v9  }
   0xa   :  { %928 = vmatpush3.bf16.msra.mxu0 %v1011_v3 }
   0xb   :  { %929 = vmatprep.subr.bf16.mxu0 %v1058_v1  ;;  %79 = vperm.xlu0 %1007, %v47_v12  }
   0xd   :  { %84 = vperm.xlu1 %1008, %v48_v13  }
   0xe   :  { %930 = vmatpush3.bf16.msra.mxu0 %v207_v10 }
   0xf   :  { %89 = vperm.xlu0 %1007, %v49_v14  }
  0x11   :  { %932 = vmatmul.mubr.msk.bf16.vlgmr.msra.gmra.mrb[0].mxu0 %vm183_vm2, %v1013_v11  ;;  %94 = vperm.xlu1 %1008, %v50_v15  }
  0x12   :  { %935 = vmatprep.mubr.msk.bf16.mxu0 %vm1059_vm0, %v1058_v1 }
  0x13   :  { %99 = vperm.xlu0 %1007, %v51_v17  }
  0x15   :  { %104 = vperm.xlu1 %1008, %v52_v18  }
  0x17   :  { %109 = vperm.xlu0 %1007, %v53_v19  }
  0x19   :  { %936 = vmatmul.mubr.msk.bf16.gmra.mrb[4].mxu0 %vm183_vm2, %v1014_v16  ;;  %114 = vperm.xlu1 %1008, %v54_v20  }
  0x1a   :  { %939 = vmatprep.mubr.msk.bf16.mxu0 %vm1059_vm0, %v1058_v1 }
  0x1b   :  { %119 = vperm.xlu0 %1007, %v55_v22  }
  0x1d   :  { %124 = vperm.xlu1 %1008, %v56_v23  }
  0x21   :  { %940 = vmatmul.mubr.msk.bf16.gmra.mrb[8].mxu0 %vm183_vm2, %v1015_v21 }
  0x22   :  { %943 = vmatprep.mubr.msk.bf16.mxu0 %vm1059_vm0, %v1058_v1 }
  0x23   :  { %10 = vsyncpa [#allocation3], 0  ;;  %377 = vperm.xlu0 %1007, %v347_v24   ;;  %v1016_v26 = vld [vmem:[%s1347_s1 + $0x18] sm:$0xff]   ;;  %382 = vperm.xlu1 %1008, %v348_v25   ;;  %v349_v27 = vld [vmem:[%s1350_s4 + $0x10] sm:$0xff]  ;;  %vm585_vm3 = vcmask 916480  }
  0x24   :  { %v350_v28 = vld [vmem:[%s1350_s4 + $0x18] sm:$0xff]  ;;  %v351_v29 = vld [vmem:[%s1350_s4 + $0x20] sm:$0xff]  ;;  %v352_v30 = vld [vmem:[%s1350_s4 + $0x28] sm:$0xff] }
  0x25   :  { %v1017_v31 = vld [vmem:[%s1347_s1 + $0x20] sm:$0xff]   ;;  %v353_v32 = vld [vmem:[%s1350_s4 + $0x30] sm:$0xff]  ;;  %v354_v33 = vld [vmem:[%s1350_s4 + $0x38] sm:$0xff] }
  0x26   :  { %v355_v34 = vld [vmem:[%s1350_s4 + $0x40] sm:$0xff]  ;;  %v356_v35 = vld [vmem:[%s1350_s4 + $0x48] sm:$0xff]  ;;  %v357_v37 = vld [vmem:[%s1350_s4 + $0x50] sm:$0xff] }
  0x27   :  { %387 = vperm.xlu0 %1007, %v349_v27   ;;  %392 = vperm.xlu1 %1008, %v350_v28   ;;  %v1018_v36 = vld [vmem:[%s1347_s1 + $0x28] sm:$0xff]   ;;  %v358_v38 = vld [vmem:[%s1350_s4 + $0x58] sm:$0xff]  ;;  %v359_v39 = vld [vmem:[%s1350_s4 + $0x60] sm:$0xff] }
  0x28   :  { %v360_v40 = vld [vmem:[%s1350_s4 + $0x68] sm:$0xff]  ;;  %v1019_v41 = vld [vmem:[%s1347_s1 + $0x30] sm:$0xff]   ;;  %v362_v43 = vld [vmem:[%s1350_s4 + $0x78] sm:$0xff] }
  0x29   :  { %944 = vmatmul.mubr.msk.bf16.gmra.mrb[12].mxu0 %vm183_vm2, %v1016_v26  ;;  %v361_v42 = vld [vmem:[%s1350_s4 + $0x70] sm:$0xff]  ;;  %v363_v44 = vld [vmem:[%s1350_s4 + $0x80] sm:$0xff]  ;;  %v364_v45 = vld [vmem:[%s1350_s4 + $0x88] sm:$0xff] }
  0x2a   :  { %947 = vmatprep.mubr.msk.bf16.mxu0 %vm1059_vm0, %v1058_v1  ;;  %v365_v46 = vld [vmem:[%s1350_s4 + $0x90] sm:$0xff]  ;;  %v366_v47 = vld [vmem:[%s1350_s4 + $0x98] sm:$0xff]  ;;  %v367_v48 = vld [vmem:[%s1350_s4 + $0xa0] sm:$0xff] }
  0x2b   :  { %397 = vperm.xlu0 %1007, %v351_v29   ;;  %402 = vperm.xlu1 %1008, %v352_v30   ;;  %v368_v49 = vld [vmem:[%s1350_s4 + $0xa8] sm:$0xff]  ;;  %v369_v50 = vld [vmem:[%s1350_s4 + $0xb0] sm:$0xff]  ;;  %v370_v51 = vld [vmem:[%s1350_s4 + $0xb8] sm:$0xff] }
  0x2c   :  { %v371_v52 = vld [vmem:[%s1350_s4 + $0xc0] sm:$0xff]  ;;  %v372_v53 = vld [vmem:[%s1350_s4 + $0xc8] sm:$0xff]  ;;  %v373_v54 = vld [vmem:[%s1350_s4 + $0xd0] sm:$0xff] }
  0x2d   :  { %v374_v55 = vld [vmem:[%s1350_s4 + $0xd8] sm:$0xff]  ;;  %v1020_v56 = vld [vmem:[%s1349_s3] sm:$0xff]  }
  0x2e   :  { %973 = vmatprep.mubr.msk.bf16.mxu1 %vm585_vm3, %v1020_v56 }
  0x2f   :  { %407 = vperm.xlu0 %1007, %v353_v32   ;;  %412 = vperm.xlu1 %1008, %v354_v33  }
  0x31   :  { %948 = vmatmul.mubr.msk.bf16.gmra.mrb[16].mxu0 %vm183_vm2, %v1017_v31 }
  0x32   :  { %951 = vmatprep.mubr.msk.bf16.mxu0 %vm1059_vm0, %v1058_v1 }
  0x33   :  { %417 = vperm.xlu0 %1007, %v355_v34   ;;  %422 = vperm.xlu1 %1008, %v356_v35  }
  0x37   :  { %427 = vperm.xlu0 %1007, %v357_v37   ;;  %432 = vperm.xlu1 %1008, %v358_v38  }
  0x39   :  { %952 = vmatmul.mubr.msk.bf16.gmra.mrb[20].mxu0 %vm183_vm2, %v1018_v36 }
  0x3a   :  { %955 = vmatprep.mubr.msk.bf16.mxu0 %vm1059_vm0, %v1058_v1 }
  0x3b   :  { %437 = vperm.xlu0 %1007, %v359_v39   ;;  %442 = vperm.xlu1 %1008, %v360_v40  }
  0x3f   :  { %447 = vperm.xlu0 %1007, %v361_v42   ;;  %452 = vperm.xlu1 %1008, %v362_v43  }
  0x41   :  { %956 = vmatmul.mubr.msk.bf16.gmra.mrb[24].mxu0 %vm183_vm2, %v1019_v41 }
  0x43   :  { %457 = vperm.xlu0 %1007, %v363_v44   ;;  %462 = vperm.xlu1 %1008, %v364_v45  }
  0x47   :  { %467 = vperm.xlu0 %1007, %v365_v46   ;;  %472 = vperm.xlu1 %1008, %v366_v47  }
  0x4b   :  { %477 = vperm.xlu0 %1007, %v367_v48   ;;  %482 = vperm.xlu1 %1008, %v368_v49  }
  0x4f   :  { %487 = vperm.xlu0 %1007, %v369_v50   ;;  %492 = vperm.xlu1 %1008, %v370_v51  }
  0x53   :  { %497 = vperm.xlu0 %1007, %v371_v52   ;;  %502 = vperm.xlu1 %1008, %v372_v53  }
  0x57   :  { %507 = vperm.xlu0 %1007, %v373_v54   ;;  %512 = vperm.xlu1 %1008, %v374_v55  }
  0x82   :  { %v60_v57 = vpop.permute.xlu0 %59 }
  0x84   :  { %v70_v1 = vpop.permute.xlu1 %69 }
  0x86   :  { %v65_v61 = vpop.permute.xlu0 %64 }
  0x88   :  { %v75_v8 = vpop.permute.xlu1 %74 }
  0x8a   :  { %v80_v15 = vpop.permute.xlu0 %79 }
  0x8c   :  { %v85_v19 = vpop.permute.xlu1 %84 }
  0x8e   :  { %v90_v26 = vpop.permute.xlu0 %89 }
  0x90   :  { %v95_v30 = vpop.permute.xlu1 %94 }
  0x92   :  { %v100_v37 = vpop.permute.xlu0 %99 }
  0x94   :  { %v105_v41 = vpop.permute.xlu1 %104 }
  0x96   :  { %v110_v48 = vpop.permute.xlu0 %109 }
  0x98   :  { %v115_v52 = vpop.permute.xlu1 %114 }
  0xe4   :  { %v243_v58 = vpop.f32.mrb[0].mxu0 }
  0xe5   :  { %v244_v59 = vadd.f32 %v243_v58, %v60_v57  ;;  %v933_v60 = vpop.f32.mrb[1].mxu0 }
  0xe6   :  { %v246_v62 = vpop.f32.mrb[2].mxu0 }
  0xe7   :  { %v247_v63 = vadd.f32 %v246_v62, %v65_v61  ;;  %v934_v0 = vpop.f32.mrb[3].mxu0  ;;  %v298_v2 = vmax.f32 %v244_v59, 0.0  ;;  %v120_v59 = vpop.permute.xlu0 %119 }
  0xe9   :  { %v299_v3 = vmax.f32 %v247_v63, 0.0  ;;  %v125_v63 = vpop.permute.xlu1 %124 }
  0xeb   :  { %v312_v4 = vpack.c.bf16 %v299_v3, %v298_v2 }
  0xec   :  { %v251_v5 = vpop.f32.mrb[4].mxu0 }
  0xed   :  { %v252_v6 = vadd.f32 %v251_v5, %v70_v1  ;;  %v937_v7 = vpop.f32.mrb[5].mxu0  ;;  %959 = vmatprep.subr.bf16.mxu1 %v312_v4 }
  0xee   :  { %v254_v9 = vpop.f32.mrb[6].mxu0  ;;  %960 = vmatpush3.bf16.msra.mxu1 %v312_v4  ;;  %v1022_v7 = vld [vmem:[%s1349_s3 + $0x10] sm:$0xff]  }
  0xef   :  { %v255_v10 = vadd.f32 %v254_v9, %v75_v8  ;;  %v938_v11 = vpop.f32.mrb[7].mxu0  ;;  %v300_v12 = vmax.f32 %v252_v6, 0.0  ;;  %v1021_v6 = vld [vmem:[%s1349_s3 + $0x8] sm:$0xff]   ;;  %v1023_v8 = vld [vmem:[%s1349_s3 + $0x18] sm:$0xff]   ;;  %v1024_v9 = vld [vmem:[%s1349_s3 + $0x20] sm:$0xff]  }
  0xf0   :  { %v1026_v11 = vld [vmem:[%s1349_s3 + $0x30] sm:$0xff]  }
  0xf1   :  { %v301_v13 = vmax.f32 %v255_v10, 0.0  ;;  %v1025_v10 = vld [vmem:[%s1349_s3 + $0x28] sm:$0xff]  }
  0xf3   :  { %v313_v14 = vpack.c.bf16 %v301_v13, %v300_v12  ;;  %v1027_v12 = vld [vmem:[%s1349_s3 + $0x38] sm:$0xff]   ;;  %v1028_v13 = vld [vmem:[%s1349_s3 + $0x40] sm:$0xff]  }
  0xf4   :  { %v259_v16 = vpop.f32.mrb[8].mxu0 }
  0xf5   :  { %v260_v17 = vadd.f32 %v259_v16, %v80_v15  ;;  %v941_v18 = vpop.f32.mrb[9].mxu0  ;;  %961 = vmatprep.subr.bf16.mxu1 %v313_v14  ;;  %v1030_v15 = vld [vmem:[%s1349_s3 + $0x50] sm:$0xff]   ;;  %v1031_v16 = vld [vmem:[%s1349_s3 + $0x58] sm:$0xff]  }
  0xf6   :  { %v262_v20 = vpop.f32.mrb[10].mxu0  ;;  %962 = vmatpush3.bf16.msra.mxu1 %v313_v14  ;;  %v1029_v14 = vld [vmem:[%s1349_s3 + $0x48] sm:$0xff]  }
  0xf7   :  { %v263_v21 = vadd.f32 %v262_v20, %v85_v19  ;;  %v942_v22 = vpop.f32.mrb[11].mxu0  ;;  %v302_v23 = vmax.f32 %v260_v17, 0.0  ;;  %v1032_v17 = vld [vmem:[%s1349_s3 + $0x60] sm:$0xff]   ;;  %v1033_v18 = vld [vmem:[%s1349_s3 + $0x68] sm:$0xff]   ;;  %v378_v19 = vpop.permute.xlu0 %377  ;;  %s1061_s3 = smov [#allocation2]  }
  0xf8   :  { %v383_v20 = vpop.permute.xlu1 %382  ;;  %s834_s15 = sshll.u32 %s1061_s3, 4  ;;  %s835_s15 = int_to_ptr.vmem [resolvable:$true] %s834_s15 }
  0xf9   :  { %v303_v24 = vmax.f32 %v263_v21, 0.0  ;;  %s1034_s16 = scalar_lea.vmem %s835_s15, 512  ;;  %p1039_p1 = scmp.lt.s32.totalorder %s835_s15, %s835_s15 }
  0xfa   :  { %p1035_p0 = scmp.ne.s32.totalorder %s835_s15, %s1034_s16  ;;  %p1040_p2 = scmp.lt.s32.totalorder %s1034_s16, %s1034_s16 }
  0xfb   :  { %v314_v25 = vpack.c.bf16 %v303_v24, %v302_v23  ;;  %v388_v21 = vpop.permute.xlu0 %387 }
  0xfc   :  { %v267_v27 = vpop.f32.mrb[12].mxu0  ;;  %v393_v22 = vpop.permute.xlu1 %392  ;;  %p1041_p3 = por %p1040_p2, %p1039_p1 }
  0xfd   :  { %v268_v28 = vadd.f32 %v267_v27, %v90_v26  ;;  %v945_v29 = vpop.f32.mrb[13].mxu0  ;;  %963 = vmatprep.subr.bf16.mxu1 %v314_v25 }
  0xfe   :  { %v270_v31 = vpop.f32.mrb[14].mxu0  ;;  %964 = vmatpush3.bf16.msra.mxu1 %v314_v25  ;;  %p1042_p4 = pnand %p1041_p3, %p1035_p0 }
  0xff   :  { %v271_v32 = vadd.f32 %v270_v31, %v95_v30  ;;  %v946_v33 = vpop.f32.mrb[15].mxu0  ;;  %v304_v34 = vmax.f32 %v268_v28, 0.0  ;;  %v398_v23 = vpop.permute.xlu0 %397 }
 0x100   :  { %v403_v24 = vpop.permute.xlu1 %402 }
 0x101   :  { %v305_v35 = vmax.f32 %v271_v32, 0.0 }
 0x103   :  { %v315_v36 = vpack.c.bf16 %v305_v35, %v304_v34  ;;  %v408_v25 = vpop.permute.xlu0 %407 }
 0x104   :  { %v275_v38 = vpop.f32.mrb[16].mxu0  ;;  %v413_v26 = vpop.permute.xlu1 %412 }
 0x105   :  { %v276_v39 = vadd.f32 %v275_v38, %v100_v37  ;;  %v949_v40 = vpop.f32.mrb[17].mxu0  ;;  %965 = vmatprep.subr.bf16.mxu1 %v315_v36 }
 0x106   :  { %v278_v42 = vpop.f32.mrb[18].mxu0  ;;  %966 = vmatpush3.bf16.msra.mxu1 %v315_v36 }
 0x107   :  { %v279_v43 = vadd.f32 %v278_v42, %v105_v41  ;;  %v950_v44 = vpop.f32.mrb[19].mxu0  ;;  %v306_v45 = vmax.f32 %v276_v39, 0.0  ;;  %v418_v27 = vpop.permute.xlu0 %417 }
 0x108   :  { %v423_v28 = vpop.permute.xlu1 %422 }
 0x109   :  { %v307_v46 = vmax.f32 %v279_v43, 0.0 }
 0x10b   :  { %v316_v47 = vpack.c.bf16 %v307_v46, %v306_v45  ;;  %v428_v29 = vpop.permute.xlu0 %427 }
 0x10c   :  { %v283_v49 = vpop.f32.mrb[20].mxu0  ;;  %v433_v32 = vpop.permute.xlu1 %432 }
 0x10d   :  { %v284_v50 = vadd.f32 %v283_v49, %v110_v48  ;;  %v953_v51 = vpop.f32.mrb[21].mxu0  ;;  %967 = vmatprep.subr.bf16.mxu1 %v316_v47 }
 0x10e   :  { %v286_v53 = vpop.f32.mrb[22].mxu0  ;;  %968 = vmatpush3.bf16.msra.mxu1 %v316_v47 }
 0x10f   :  { %v287_v54 = vadd.f32 %v286_v53, %v115_v52  ;;  %v954_v55 = vpop.f32.mrb[23].mxu0  ;;  %v308_v56 = vmax.f32 %v284_v50, 0.0  ;;  %v438_v35 = vpop.permute.xlu0 %437 }
 0x110   :  { %v443_v37 = vpop.permute.xlu1 %442 }
 0x111   :  { %v309_v57 = vmax.f32 %v287_v54, 0.0 }
 0x113   :  { %v317_v58 = vpack.c.bf16 %v309_v57, %v308_v56  ;;  %v448_v50 = vpop.permute.xlu0 %447 }
 0x114   :  { %v291_v60 = vpop.f32.mrb[24].mxu0  ;;  %v453_v57 = vpop.permute.xlu1 %452 }
 0x115   :  { %v292_v61 = vadd.f32 %v291_v60, %v120_v59  ;;  %v957_v62 = vpop.f32.mrb[25].mxu0  ;;  %969 = vmatprep.subr.bf16.mxu1 %v317_v58 }
 0x116   :  { %v294_v0 = vpop.f32.mrb[26].mxu0  ;;  %970 = vmatpush3.bf16.msra.mxu1 %v317_v58 }
 0x117   :  { %v295_v1 = vadd.f32 %v294_v0, %v125_v63  ;;  %v958_v2 = vpop.f32.mrb[27].mxu0  ;;  %v310_v3 = vmax.f32 %v292_v61, 0.0 }
 0x118   :  { %v458_v2 = vpop.permute.xlu0 %457 }
 0x119   :  { %v311_v4 = vmax.f32 %v295_v1, 0.0 }
 0x11b   :  { %v318_v5 = vpack.c.bf16 %v311_v4, %v310_v3 }
 0x11d   :  { %971 = vmatprep.subr.bf16.mxu1 %v318_v5 }
 0x11e   :  { %972 = vmatpush3.bf16.msra.mxu1 %v318_v5 }
 0x121   :  { %974 = vmatmul.mubr.msk.bf16.vlgmr.msra.gmra.mrb[0].mxu1 %vm585_vm3, %v1021_v6 }
 0x122   :  { %977 = vmatprep.mubr.msk.bf16.mxu1 %vm585_vm3, %v1022_v7 }
 0x129   :  { %978 = vmatmul.mubr.msk.bf16.gmra.mrb[4].mxu1 %vm585_vm3, %v1023_v8  ;;  %v463_v8 = vpop.permute.xlu1 %462 }
 0x12a   :  { %981 = vmatprep.mubr.msk.bf16.mxu1 %vm585_vm3, %v1024_v9 }
 0x131   :  { %982 = vmatmul.mubr.msk.bf16.gmra.mrb[8].mxu1 %vm585_vm3, %v1025_v10 }
 0x132   :  { %985 = vmatprep.mubr.msk.bf16.mxu1 %vm585_vm3, %v1026_v11 }
 0x139   :  { %986 = vmatmul.mubr.msk.bf16.gmra.mrb[12].mxu1 %vm585_vm3, %v1027_v12 }
 0x13a   :  { %989 = vmatprep.mubr.msk.bf16.mxu1 %vm585_vm3, %v1028_v13 }
 0x141   :  { %990 = vmatmul.mubr.msk.bf16.gmra.mrb[16].mxu1 %vm585_vm3, %v1029_v14 }
 0x142   :  { %993 = vmatprep.mubr.msk.bf16.mxu1 %vm585_vm3, %v1030_v15 }
 0x149   :  { %994 = vmatmul.mubr.msk.bf16.gmra.mrb[20].mxu1 %vm585_vm3, %v1031_v16  ;;  %v468_v16 = vpop.permute.xlu0 %467 }
 0x14a   :  { %997 = vmatprep.mubr.msk.bf16.mxu1 %vm585_vm3, %v1032_v17 }
 0x151   :  { %998 = vmatmul.mubr.msk.bf16.gmra.mrb[24].mxu1 %vm585_vm3, %v1033_v18 }
 0x1f4   :  { %v975_v30 = vpop.f32.mrb[0].mxu1 }
 0x1f5   :  { %v662_v31 = vpop.f32.mrb[1].mxu1  ;;  %v671_v36 = vadd.f32 %v975_v30, %v388_v21  ;;  %v473_v21 = vpop.permute.xlu1 %472 }
 0x1f6   :  { %v976_v33 = vpop.f32.mrb[2].mxu1  ;;  %v663_v38 = vadd.f32 %v662_v31, %v378_v19  ;;  %v478_v31 = vpop.permute.xlu0 %477 }
 0x1f7   :  { %v665_v34 = vpop.f32.mrb[3].mxu1  ;;  %v674_v40 = vadd.f32 %v976_v33, %v393_v22  ;;  %v775_v46 = vmax.f32 %v671_v36, 0.0 }
 0x1f8   :  { %v666_v43 = vadd.f32 %v665_v34, %v383_v20  ;;  %v773_v51 = vmax.f32 %v663_v38, 0.0 }
 0x1f9   :  { %v776_v54 = vmax.f32 %v674_v40, 0.0  ;;  %v483_v36 = vpop.permute.xlu1 %482 }
 0x1fa   :  { %v774_v58 = vmax.f32 %v666_v43, 0.0 }
 0x1fc   :  { %v979_v39 = vpop.f32.mrb[4].mxu1 }
 0x1fd   :  { %v687_v41 = vadd.f32 %v979_v39, %v408_v25  ;;  %v678_v42 = vpop.f32.mrb[5].mxu1 }
 0x1fe   :  { %v679_v44 = vadd.f32 %v678_v42, %v398_v23  ;;  %v980_v45 = vpop.f32.mrb[6].mxu1 }
 0x1ff   :  { %v779_v47 = vmax.f32 %v687_v41, 0.0  ;;  %v690_v48 = vadd.f32 %v980_v45, %v413_v26  ;;  %v681_v49 = vpop.f32.mrb[7].mxu1 }
 0x200   :  { %v777_v52 = vmax.f32 %v679_v44, 0.0  ;;  %v682_v53 = vadd.f32 %v681_v49, %v403_v24 }
 0x201   :  { %v803_v55 = vmax.f32 %v775_v46, %v779_v47  ;;  %v780_v56 = vmax.f32 %v690_v48, 0.0  ;;  %v488_v46 = vpop.permute.xlu0 %487 }
 0x202   :  { %v801_v59 = vmax.f32 %v773_v51, %v777_v52  ;;  %v778_v60 = vmax.f32 %v682_v53, 0.0 }
 0x203   :  { %v804_v61 = vmax.f32 %v776_v54, %v780_v56 }
 0x204   :  { %v802_v62 = vmax.f32 %v774_v58, %v778_v60  ;;  %v983_v63 = vpop.f32.mrb[8].mxu1 }
 0x205   :  { %v703_v0 = vadd.f32 %v983_v63, %v428_v29  ;;  %v694_v1 = vpop.f32.mrb[9].mxu1  ;;  %v498_v58 = vpop.permute.xlu0 %497 }
 0x206   :  { %v695_v3 = vadd.f32 %v694_v1, %v418_v27  ;;  %v984_v4 = vpop.f32.mrb[10].mxu1 }
 0x207   :  { %v783_v5 = vmax.f32 %v703_v0, 0.0  ;;  %v706_v6 = vadd.f32 %v984_v4, %v433_v32  ;;  %v697_v7 = vpop.f32.mrb[11].mxu1 }
 0x208   :  { %v781_v9 = vmax.f32 %v695_v3, 0.0  ;;  %v698_v10 = vadd.f32 %v697_v7, %v423_v28 }
 0x209   :  { %v807_v11 = vmax.f32 %v803_v55, %v783_v5  ;;  %v784_v12 = vmax.f32 %v706_v6, 0.0 }
 0x20a   :  { %v805_v13 = vmax.f32 %v801_v59, %v781_v9  ;;  %v782_v14 = vmax.f32 %v698_v10, 0.0 }
 0x20b   :  { %v808_v15 = vmax.f32 %v804_v61, %v784_v12 }
 0x20c   :  { %v806_v17 = vmax.f32 %v802_v62, %v782_v14  ;;  %v987_v18 = vpop.f32.mrb[12].mxu1 }
 0x20d   :  { %v719_v19 = vadd.f32 %v987_v18, %v448_v50  ;;  %v710_v20 = vpop.f32.mrb[13].mxu1  ;;  %v493_v50 = vpop.permute.xlu1 %492 }
 0x20e   :  { %v711_v22 = vadd.f32 %v710_v20, %v438_v35  ;;  %v988_v23 = vpop.f32.mrb[14].mxu1 }
 0x20f   :  { %v787_v24 = vmax.f32 %v719_v19, 0.0  ;;  %v722_v25 = vadd.f32 %v988_v23, %v453_v57  ;;  %v713_v26 = vpop.f32.mrb[15].mxu1 }
 0x210   :  { %v785_v27 = vmax.f32 %v711_v22, 0.0  ;;  %v714_v29 = vadd.f32 %v713_v26, %v443_v37 }
 0x211   :  { %v811_v30 = vmax.f32 %v807_v11, %v787_v24  ;;  %v788_v28 = vmax.f32 %v722_v25, 0.0  ;;  %v503_v0 = vpop.permute.xlu1 %502 }
 0x212   :  { %v809_v32 = vmax.f32 %v805_v13, %v785_v27  ;;  %v786_v33 = vmax.f32 %v714_v29, 0.0 }
 0x213   :  { %v812_v34 = vmax.f32 %v808_v15, %v788_v28 }
 0x214   :  { %v810_v38 = vmax.f32 %v806_v17, %v786_v33  ;;  %v991_v39 = vpop.f32.mrb[16].mxu1 }
 0x215   :  { %v735_v40 = vadd.f32 %v991_v39, %v468_v16  ;;  %v726_v41 = vpop.f32.mrb[17].mxu1  ;;  %v513_v13 = vpop.permute.xlu1 %512 }
 0x216   :  { %v727_v42 = vadd.f32 %v726_v41, %v458_v2  ;;  %v992_v43 = vpop.f32.mrb[18].mxu1 }
 0x217   :  { %v791_v35 = vmax.f32 %v735_v40, 0.0  ;;  %v738_v44 = vadd.f32 %v992_v43, %v473_v21  ;;  %v729_v45 = vpop.f32.mrb[19].mxu1 }
 0x218   :  { %v789_v47 = vmax.f32 %v727_v42, 0.0  ;;  %v730_v48 = vadd.f32 %v729_v45, %v463_v8  ;;  %v508_v8 = vpop.permute.xlu0 %507 }
 0x219   :  { %v815_v37 = vmax.f32 %v811_v30, %v791_v35  ;;  %v792_v49 = vmax.f32 %v738_v44, 0.0 }
 0x21a   :  { %v813_v51 = vmax.f32 %v809_v32, %v789_v47  ;;  %v790_v52 = vmax.f32 %v730_v48, 0.0 }
 0x21b   :  { %v816_v53 = vmax.f32 %v812_v34, %v792_v49 }
 0x21c   :  { %v814_v54 = vmax.f32 %v810_v38, %v790_v52  ;;  %v995_v55 = vpop.f32.mrb[20].mxu1 }
 0x21d   :  { %v751_v56 = vadd.f32 %v995_v55, %v488_v46  ;;  %v742_v57 = vpop.f32.mrb[21].mxu1 }
 0x21e   :  { %v743_v59 = vadd.f32 %v742_v57, %v478_v31  ;;  %v996_v60 = vpop.f32.mrb[22].mxu1 }
 0x21f   :  { %v795_v61 = vmax.f32 %v751_v56, 0.0  ;;  %v754_v62 = vadd.f32 %v996_v60, %v493_v50  ;;  %v745_v63 = vpop.f32.mrb[23].mxu1 }
 0x220   :  { %v793_v1 = vmax.f32 %v743_v59, 0.0  ;;  %v746_v2 = vadd.f32 %v745_v63, %v483_v36 }
 0x221   :  { %v819_v3 = vmax.f32 %v815_v37, %v795_v61  ;;  %v796_v4 = vmax.f32 %v754_v62, 0.0 }
 0x222   :  { %v817_v5 = vmax.f32 %v813_v51, %v793_v1  ;;  %v794_v6 = vmax.f32 %v746_v2, 0.0 }
 0x223   :  { %v820_v7 = vmax.f32 %v816_v53, %v796_v4 }
 0x224   :  { %v818_v9 = vmax.f32 %v814_v54, %v794_v6  ;;  %v999_v10 = vpop.f32.mrb[24].mxu1 }
 0x225   :  { %v767_v11 = vadd.f32 %v999_v10, %v508_v8  ;;  %v758_v12 = vpop.f32.mrb[25].mxu1 }
 0x226   :  { %v759_v14 = vadd.f32 %v758_v12, %v498_v58  ;;  %v1000_v15 = vpop.f32.mrb[26].mxu1 }
 0x227   :  { %v799_v16 = vmax.f32 %v767_v11, 0.0  ;;  %v770_v17 = vadd.f32 %v1000_v15, %v513_v13  ;;  %v761_v18 = vpop.f32.mrb[27].mxu1 }
 0x228   :  { %v797_v19 = vmax.f32 %v759_v14, 0.0  ;;  %v762_v20 = vadd.f32 %v761_v18, %v503_v0 }
 0x229   :  { %v823_v21 = vmax.f32 %v819_v3, %v799_v16  ;;  %v800_v22 = vmax.f32 %v770_v17, 0.0 }
 0x22a   :  { %v821_v23 = vmax.f32 %v817_v5, %v797_v19  ;;  %v798_v24 = vmax.f32 %v762_v20, 0.0 }
 0x22b   :  { %827 = vst [vmem:[#allocation2 + $0x10] sm:$0xff] %v823_v21  ;;  %v824_v25 = vmax.f32 %v820_v7, %v800_v22 }
 0x22c   :  { %825 = vst [vmem:[#allocation2] sm:$0xff] %v821_v23  ;;  %v822_v26 = vmax.f32 %v818_v9, %v798_v24 }
 0x22d   :  { %828 = vst [vmem:[#allocation2 + $0x18] sm:$0xff] %v824_v25 }
 0x22e   :  { %826 = vst [vmem:[#allocation2 + $0x8] sm:$0xff] %v822_v26 }
 0x22f   :  { %1045 = shalt.err (!%p1042_p4)
}
 0x230   :  { %s1046_s18 = scalar_lea.hbm %s1351_s5, 512 }
 0x231   :  { %p1047_p5 = scmp.ne.s32.totalorder %s1351_s5, %s1046_s18  ;;  %p1050_p6 = scmp.lt.u32.totalorder %s1046_s18, %s1351_s5 }
 0x233   :  { %p1052_p7 = pnand %p1050_p6, %p1047_p5 }
 0x235   :  { %1055 = shalt.err (!%p1052_p7)
}
 0x236   :  { %s1062_s23 = smov 128   ;;  %s1063_s1 = smov 8  }
 0x237   :  { %840 = dma.vmem_to_hbm [thread:$0]  %s835_s15, 512, %s1351_s5, [#allocation3], %s1062_s23, %s1062_s23, %s1063_s1  }
 0x238   :  { %1056 = dma.done.wait [#allocation3], 512  }
 0x239   :  { %1057 = vsyncadd [#allocation3], 4294966784 }
 0x23a   :  { %844 = vsyncpa [#allocation3], 1 }

</bundles_post_ra>
